<compile_context>
chip_gen: v5e
topology: v5e:2x2
jax: 0.10.0
libtpu: 0.0.40
codegen_flags: <defaults>
</compile_context>

<pallas_src>
import jax
import jax.numpy as jnp
from jax.experimental import pallas as pl
from jax.experimental.pallas import tpu as pltpu

INPUT_DIM = 2
HIDDEN_DIM = 128
OUTPUT_DIM = 1


def _round_up(n, m):
    return ((n + m - 1) // m) * m


def _mlnet_kernel(xt_ref, w1_ref, b1_ref, w2_ref, b2_ref, o_ref):
    # xt_ref: [2, TB]        features on sublanes, batch on lanes (lane-dense)
    # w1_ref: [HIDDEN, 2]    == PyTorch fc1.weight layout [out, in], VMEM-resident
    # b1_ref: [HIDDEN, 1]    fc1.bias as a column
    # w2_ref: [HIDDEN, 1]    == PyTorch fc2.weight.T
    # b2_ref: [1, 1] in SMEM (scalar)
    # o_ref : [1, TB]        lane-dense output slab
    x0 = xt_ref[0:1, :]                      # [1, TB]
    x1 = xt_ref[1:2, :]                      # [1, TB]

    # Linear(2 -> 128): two broadcast FMAs on the VPU (MXU with K=2 would be
    # ~2/256 utilized and lane-pad the operand).
    h = w1_ref[:, 0:1] * x0 + w1_ref[:, 1:2] * x1 + b1_ref[...]   # [HIDDEN, TB]
    h = jnp.maximum(h, 0.0)                  # ReLU

    # Dropout(p=0.2): identity in eval/inference mode.

    # Linear(128 -> 1): VPU multiply + sublane (XLU) reduction; result stays
    # lane-dense as [1, TB].
    y = jnp.sum(h * w2_ref[...], axis=0, keepdims=True) + b2_ref[0, 0]
    o_ref[...] = y.astype(o_ref.dtype)


def mlnet_reduced_forward(x, w1, b1, w2, b2, *, block_b=4096):
    """x: [B, 2] f32; w1: [128, 2]; b1: [128, 1]; w2: [128, 1]; b2: [1, 1].

    Returns [B, 1] f32. block_b is the batch tile (lane) width; sweep
    {2048, 4096, 8192} per generation.
    """
    assert block_b % 128 == 0
    B = x.shape[0]
    tb = min(block_b, _round_up(B, 128))          # lane-dim multiple of 128
    b_pad = _round_up(B, tb)

    # Lane-dense input: present x as [2, B] (batch on lanes), pad batch to tile.
    xt = jnp.transpose(x)                         # [2, B]
    if b_pad != B:
        xt = jnp.pad(xt, ((0, 0), (0, b_pad - B)))

    grid = (b_pad // tb,)

    out = pl.pallas_call(
        _mlnet_kernel,
        out_shape=jax.ShapeDtypeStruct((1, b_pad), jnp.float32),
        grid=grid,
        in_specs=[
            pl.BlockSpec((2, tb), lambda i: (0, i)),                 # x tile (lane-dense)
            pl.BlockSpec((HIDDEN_DIM, INPUT_DIM), lambda i: (0, 0)), # w1, resident
            pl.BlockSpec((HIDDEN_DIM, 1), lambda i: (0, 0)),         # b1, resident
            pl.BlockSpec((HIDDEN_DIM, 1), lambda i: (0, 0)),         # w2, resident
            pl.BlockSpec(memory_space=pltpu.MemorySpace.SMEM),       # b2 scalar
        ],
        out_specs=pl.BlockSpec((1, tb), lambda i: (0, i)),           # lane-dense output
        compiler_params=pltpu.CompilerParams(
            dimension_semantics=("parallel",),        # shard batch tiles across TCs
            vmem_limit_bytes=48 * 1024 * 1024,        # headroom above v5e's 16 MiB default,
                                                      # safely below v7x's 64 MiB physical
        ),
    )(xt, w1, b1, w2, b2)

    return jnp.transpose(out[:, :B])              # [B, 1]


def reference_forward(x, w1, b1, w2, b2):
    # Plain-JAX eval-mode forward (dropout = identity).
    h = jnp.maximum(x @ w1.T + b1.T, 0.0)         # [B, 128]
    return h @ w2 + b2                            # [B, 1]


def init_params(key):
    # Mimic PyTorch nn.Linear default init U(-1/sqrt(fan_in), 1/sqrt(fan_in)),
    # already in the layouts the kernel expects (synthetic params, not a checkpoint).
    k1, k2, k3, k4 = jax.random.split(key, 4)
    bound1 = 1.0 / jnp.sqrt(INPUT_DIM)
    bound2 = 1.0 / jnp.sqrt(HIDDEN_DIM)
    w1 = jax.random.uniform(k1, (HIDDEN_DIM, INPUT_DIM), jnp.float32, -bound1, bound1)
    b1 = jax.random.uniform(k2, (HIDDEN_DIM, 1), jnp.float32, -bound1, bound1)
    w2 = jax.random.uniform(k3, (HIDDEN_DIM, OUTPUT_DIM), jnp.float32, -bound2, bound2)
    b2 = jax.random.uniform(k4, (1, 1), jnp.float32, -bound2, bound2)
    return w1, b1, w2, b2


if __name__ == "__main__":
    key = jax.random.PRNGKey(0)
    kx, kp = jax.random.split(key)
    w1, b1, w2, b2 = init_params(kp)

    # Small demo shape (module fixes input_dim=2, hidden=128, output=1).
    batch = 8
    x = jax.random.normal(kx, (batch, INPUT_DIM), jnp.float32)
    out = mlnet_reduced_forward(x, w1, b1, w2, b2)
    jax.block_until_ready(out)
    ref = reference_forward(x, w1, b1, w2, b2)
    assert out.shape == (batch, OUTPUT_DIM)
    assert jnp.allclose(out, ref, atol=1e-4, rtol=1e-4)

    # Exercise the padded / multi-grid-step path (B not a multiple of the tile).
    batch2 = 1000
    x2 = jax.random.normal(jax.random.PRNGKey(1), (batch2, INPUT_DIM), jnp.float32)
    out2 = mlnet_reduced_forward(x2, w1, b1, w2, b2, block_b=256)
    jax.block_until_ready(out2)
    ref2 = reference_forward(x2, w1, b1, w2, b2)
    assert out2.shape == (batch2, OUTPUT_DIM)
    assert jnp.allclose(out2, ref2, atol=1e-4, rtol=1e-4)

    print("KERNEL_OK")
</pallas_src>

<mosaic_0001>
module attributes {stable_mosaic.version = 11 : i64} {
  func.func @_mlnet_kernel(%arg0: i32, %arg1: memref<2x128xf32, #tpu.memory_space<vmem>>, %arg2: memref<128x2xf32, #tpu.memory_space<vmem>>, %arg3: memref<128x1xf32, #tpu.memory_space<vmem>>, %arg4: memref<128x1xf32, #tpu.memory_space<vmem>>, %arg5: memref<1x1xf32, #tpu.memory_space<smem>>, %arg6: memref<1x128xf32, #tpu.memory_space<vmem>>) attributes {dimension_semantics = [#tpu.dimension_semantics<parallel>], iteration_bounds = array<i64: 1>, scalar_prefetch = 0 : i64, scratch_operands = 0 : i64, tpu.core_type = #tpu.core_type<tc>, window_params = [{transform_indices = @transform_0, window_bounds = array<i64: 2, 128>}, {pipeline_mode = #tpu.pipeline_mode<synchronous>, transform_indices = @transform_1, window_bounds = array<i64: 128, 2>}, {pipeline_mode = #tpu.pipeline_mode<synchronous>, transform_indices = @transform_2, window_bounds = array<i64: 128, 1>}, {pipeline_mode = #tpu.pipeline_mode<synchronous>, transform_indices = @transform_3, window_bounds = array<i64: 128, 1>}, {transform_indices = @transform_4, window_bounds = array<i64: 1, 1>}, {transform_indices = @transform_5, window_bounds = array<i64: 1, 128>}]} {
    %c0 = arith.constant 0 : index
    %c0_0 = arith.constant 0 : index
    %0 = vector.load %arg1[%c0, %c0_0] : memref<2x128xf32, #tpu.memory_space<vmem>>, vector<1x128xf32>
    %c1 = arith.constant 1 : index
    %c0_1 = arith.constant 0 : index
    %1 = vector.load %arg1[%c1, %c0_1] : memref<2x128xf32, #tpu.memory_space<vmem>>, vector<1x128xf32>
    %c0_2 = arith.constant 0 : index
    %c0_3 = arith.constant 0 : index
    %2 = vector.load %arg2[%c0_2, %c0_3] : memref<128x2xf32, #tpu.memory_space<vmem>>, vector<128x1xf32>
    %3 = vector.broadcast %2 : vector<128x1xf32> to vector<128x128xf32>
    %4 = vector.broadcast %0 : vector<1x128xf32> to vector<128x128xf32>
    %5 = arith.mulf %3, %4 : vector<128x128xf32>
    %c0_4 = arith.constant 0 : index
    %c1_5 = arith.constant 1 : index
    %6 = vector.load %arg2[%c0_4, %c1_5] : memref<128x2xf32, #tpu.memory_space<vmem>>, vector<128x1xf32>
    %7 = vector.broadcast %6 : vector<128x1xf32> to vector<128x128xf32>
    %8 = vector.broadcast %1 : vector<1x128xf32> to vector<128x128xf32>
    %9 = arith.mulf %7, %8 : vector<128x128xf32>
    %10 = arith.addf %5, %9 : vector<128x128xf32>
    %c0_6 = arith.constant 0 : index
    %c0_7 = arith.constant 0 : index
    %11 = vector.load %arg3[%c0_6, %c0_7] : memref<128x1xf32, #tpu.memory_space<vmem>>, vector<128x1xf32>
    %12 = vector.broadcast %11 : vector<128x1xf32> to vector<128x128xf32>
    %13 = arith.addf %10, %12 : vector<128x128xf32>
    %cst = arith.constant 0.000000e+00 : f32
    %14 = vector.broadcast %cst : f32 to vector<128x128xf32>
    %15 = arith.maximumf %13, %14 : vector<128x128xf32>
    %c0_8 = arith.constant 0 : index
    %c0_9 = arith.constant 0 : index
    %16 = vector.load %arg4[%c0_8, %c0_9] : memref<128x1xf32, #tpu.memory_space<vmem>>, vector<128x1xf32>
    %17 = vector.broadcast %16 : vector<128x1xf32> to vector<128x128xf32>
    %18 = arith.mulf %15, %17 : vector<128x128xf32>
    %cst_10 = arith.constant dense<0.000000e+00> : vector<128xf32>
    %19 = vector.multi_reduction <add>, %18, %cst_10 [0] : vector<128x128xf32> to vector<128xf32>
    %20 = vector.shape_cast %19 : vector<128xf32> to vector<1x128xf32>
    %c0_11 = arith.constant 0 : index
    %c0_12 = arith.constant 0 : index
    %21 = memref.load %arg5[%c0_11, %c0_12] : memref<1x1xf32, #tpu.memory_space<smem>>
    %22 = vector.broadcast %21 : f32 to vector<1x128xf32>
    %23 = arith.addf %20, %22 : vector<1x128xf32>
    %c0_13 = arith.constant 0 : index
    %c0_14 = arith.constant 0 : index
    %24 = vector.load %arg6[%c0_13, %c0_14] : memref<1x128xf32, #tpu.memory_space<vmem>>, vector<1x128xf32>
    tpu.vector_store %arg6[%c0_13, %c0_14], %23 {strides = array<i32>} : memref<1x128xf32, #tpu.memory_space<vmem>>, vector<1x128xf32>,
    return
  }
  func.func @transform_0(%arg0: i32) -> (i32, i32) {
    %c0_i32 = arith.constant 0 : i32
    %c0_i32_0 = arith.constant 0 : i32
    return %c0_i32, %arg0 : i32, i32
  }
  func.func @transform_1(%arg0: i32) -> (i32, i32) {
    %c0_i32 = arith.constant 0 : i32
    %c0_i32_0 = arith.constant 0 : i32
    %c0_i32_1 = arith.constant 0 : i32
    return %c0_i32, %c0_i32_0 : i32, i32
  }
  func.func @transform_2(%arg0: i32) -> (i32, i32) {
    %c0_i32 = arith.constant 0 : i32
    %c0_i32_0 = arith.constant 0 : i32
    %c0_i32_1 = arith.constant 0 : i32
    return %c0_i32, %c0_i32_0 : i32, i32
  }
  func.func @transform_3(%arg0: i32) -> (i32, i32) {
    %c0_i32 = arith.constant 0 : i32
    %c0_i32_0 = arith.constant 0 : i32
    %c0_i32_1 = arith.constant 0 : i32
    return %c0_i32, %c0_i32_0 : i32, i32
  }
  func.func @transform_4(%arg0: i32) -> (i32, i32) {
    %c0_i32 = arith.constant 0 : i32
    %c0_i32_0 = arith.constant 0 : i32
    %c0_i32_1 = arith.constant 0 : i32
    return %c0_i32, %c0_i32_0 : i32, i32
  }
  func.func @transform_5(%arg0: i32) -> (i32, i32) {
    %c0_i32 = arith.constant 0 : i32
    %c0_i32_0 = arith.constant 0 : i32
    return %c0_i32, %arg0 : i32, i32
  }
}

</mosaic_0001>

<bundles_post_ra>
// kernel: tpu_custom_call.1
= control target key start
LH: loop header
LB: loop body
LE: loop exit
PB: predicated region body
PF: predicated region fallthrough
CT: control target
= control target key end

     0   :  { %v554_v2 = vmov 1   ;;  %v555_v3 = vmov 0   ;;  %s836_s0 = inlined_call_operand.vmem [shape: f32[2,128], index: 0, kind: input, shape index: {}]   ;;  %s837_s1 = inlined_call_operand.vmem [shape: f32[128,2], index: 1, kind: input, shape index: {}]   ;;  %s838_s2 = inlined_call_operand.vmem [shape: f32[128,1], index: 2, kind: input, shape index: {}]   ;;  %s839_s3 = inlined_call_operand.vmem [shape: f32[128,1], index: 3, kind: input, shape index: {}]   ;;  %s840_s4 = inlined_call_operand.<no memory space> [shape: f32[1,1], index: 4, kind: input, shape index: {}]   ;;  %s841_s5 = inlined_call_operand.hbm [shape: f32[1,128], index: 5, kind: output, shape index: {}]  }
   0x1   :  { %v28_v0 = vld [vmem:[%s837_s1 + $0x20] sm:$0xff]  ;;  %v26_v1 = vld [vmem:[%s837_s1 + $0x10] sm:$0xff]  ;;  %522 = vset.pattern.permute.xlu0 %v554_v2  ;;  %519 = vset.pattern.permute.xlu2 %v555_v3 }
   0x2   :  { %518 = vset.pattern.permute.xlu1 %v555_v3  ;;  %62 = vperm.xlu2 %519, %v28_v0  }
   0x3   :  { %146 = vperm.xlu0 %522, %v26_v1   ;;  %52 = vperm.xlu1 %518, %v26_v1  }
   0x4   :  { %11 = vsyncpa [#allocation4], 0  ;;  %v29_v4 = vld [vmem:[%s837_s1 + $0x28] sm:$0xff]  ;;  %v31_v5 = vld [vmem:[%s837_s1 + $0x38] sm:$0xff]  ;;  %s556_s13 = smov [#allocation3]   ;;  %s506_s17 = sshll.u32 %s841_s5, 4  ;;  %s507_s17 = int_to_ptr.hbm [resolvable:$true] %s506_s17 }
   0x5   :  { %v27_v6 = vld [vmem:[%s837_s1 + $0x18] sm:$0xff]  ;;  %v32_v7 = vld [vmem:[%s837_s1 + $0x40] sm:$0xff]  ;;  %v34_v8 = vld [vmem:[%s837_s1 + $0x50] sm:$0xff]  ;;  %s504_s14 = sshll.u32 %s556_s13, 4  ;;  %s505_s14 = int_to_ptr.vmem [resolvable:$true] %s504_s14 }
   0x6   :  { %v35_v9 = vld [vmem:[%s837_s1 + $0x58] sm:$0xff]  ;;  %v37_v10 = vld [vmem:[%s837_s1 + $0x68] sm:$0xff]  ;;  %v38_v11 = vld [vmem:[%s837_s1 + $0x70] sm:$0xff] }
   0x7   :  { %v24_v12 = vld [vmem:[%s837_s1] sm:$0xff]  ;;  %v25_v13 = vld [vmem:[%s837_s1 + $0x8] sm:$0xff]  ;;  %v30_v14 = vld [vmem:[%s837_s1 + $0x30] sm:$0xff] }
   0x8   :  { %v33_v15 = vld [vmem:[%s837_s1 + $0x48] sm:$0xff]  ;;  %v36_v16 = vld [vmem:[%s837_s1 + $0x60] sm:$0xff]  ;;  %v39_v17 = vld [vmem:[%s837_s1 + $0x78] sm:$0xff] }
   0x9   :  { %v234_v18 = vld [vmem:[%s838_s2] sm:$0xff]  ;;  %v239_v19 = vld [vmem:[%s838_s2 + $0x28] sm:$0xff]  ;;  %v236_v20 = vld [vmem:[%s838_s2 + $0x10] sm:$0xff] }
   0xa   :  { %67 = vperm.xlu2 %519, %v29_v4   ;;  %v235_v21 = vld [vmem:[%s838_s2 + $0x8] sm:$0xff]  ;;  %v242_v23 = vld [vmem:[%s838_s2 + $0x40] sm:$0xff]  ;;  %v237_v25 = vld [vmem:[%s838_s2 + $0x18] sm:$0xff] }
   0xb   :  { %166 = vperm.xlu0 %522, %v31_v5   ;;  %57 = vperm.xlu1 %518, %v27_v6   ;;  %v238_v24 = vld [vmem:[%s838_s2 + $0x20] sm:$0xff]  ;;  %v245_v27 = vld [vmem:[%s838_s2 + $0x58] sm:$0xff]  ;;  %v240_v29 = vld [vmem:[%s838_s2 + $0x30] sm:$0xff] }
   0xc   :  { %v241_v28 = vld [vmem:[%s838_s2 + $0x38] sm:$0xff]  ;;  %v674_v31 = vld [vmem:[%s836_s0] ss:$0 sm:$0xff]  ;;  %v248_v32 = vld [vmem:[%s838_s2 + $0x70] sm:$0xff] }
   0xd   :  { %v682_v33 = vld [vmem:[%s836_s0 + $0x1] ss:$0 sm:$0xff]  ;;  %v244_v34 = vld [vmem:[%s838_s2 + $0x50] sm:$0xff]  ;;  %v243_v35 = vld [vmem:[%s838_s2 + $0x48] sm:$0xff] }
   0xe   :  { %v363_v42 = vld [vmem:[%s839_s3 + $0x8] sm:$0xff]  ;;  %v246_v44 = vld [vmem:[%s838_s2 + $0x60] sm:$0xff]  ;;  %v249_v50 = vld [vmem:[%s838_s2 + $0x78] sm:$0xff] }
   0xf   :  { %v247_v43 = vld [vmem:[%s838_s2 + $0x68] sm:$0xff]  ;;  %v366_v48 = vld [vmem:[%s839_s3 + $0x20] sm:$0xff]  ;;  %v369_v57 = vld [vmem:[%s839_s3 + $0x38] sm:$0xff] }
  0x10   :  { %v362_v49 = vld [vmem:[%s839_s3] sm:$0xff]  ;;  %v365_v58 = vld [vmem:[%s839_s3 + $0x18] sm:$0xff]  ;;  %v364_v59 = vld [vmem:[%s839_s3 + $0x10] sm:$0xff] }
  0x12   :  { %82 = vperm.xlu2 %519, %v32_v7  }
  0x13   :  { %178 = vperm.xlu0 %522, %v34_v8   ;;  %77 = vperm.xlu1 %518, %v31_v5  }
  0x1a   :  { %97 = vperm.xlu2 %519, %v35_v9  }
  0x1b   :  { %190 = vperm.xlu0 %522, %v37_v10   ;;  %92 = vperm.xlu1 %518, %v34_v8  }
  0x22   :  { %112 = vperm.xlu2 %519, %v38_v11  }
  0x23   :  { %523 = vset.pattern.permute.xlu0 %v555_v3  ;;  %107 = vperm.xlu1 %518, %v37_v10  }
  0x24   :  { %42 = vperm.xlu0 %523, %v24_v12  }
  0x2a   :  { %521 = vset.pattern.permute.xlu2 %v554_v2 }
  0x2b   :  { %520 = vset.pattern.permute.xlu1 %v554_v2  ;;  %142 = vperm.xlu2 %521, %v25_v13  }
  0x2c   :  { %47 = vperm.xlu0 %523, %v25_v13   ;;  %138 = vperm.xlu1 %520, %v24_v12  }
  0x33   :  { %154 = vperm.xlu2 %521, %v28_v0  }
  0x34   :  { %72 = vperm.xlu0 %523, %v30_v14   ;;  %150 = vperm.xlu1 %520, %v27_v6   ;;  %v368_v6 = vld [vmem:[%s839_s3 + $0x30] sm:$0xff] }
  0x3b   :  { %162 = vperm.xlu2 %521, %v30_v14   ;;  %v375_v14 = vld [vmem:[%s839_s3 + $0x68] sm:$0xff] }
  0x3c   :  { %87 = vperm.xlu0 %523, %v33_v15   ;;  %158 = vperm.xlu1 %520, %v29_v4   ;;  %v372_v4 = vld [vmem:[%s839_s3 + $0x50] sm:$0xff] }
  0x43   :  { %174 = vperm.xlu2 %521, %v33_v15   ;;  %v371_v15 = vld [vmem:[%s839_s3 + $0x48] sm:$0xff] }
  0x44   :  { %102 = vperm.xlu0 %523, %v36_v16   ;;  %170 = vperm.xlu1 %520, %v32_v7   ;;  %v367_v7 = vld [vmem:[%s839_s3 + $0x28] sm:$0xff] }
  0x4b   :  { %186 = vperm.xlu2 %521, %v36_v16   ;;  %v370_v16 = vld [vmem:[%s839_s3 + $0x40] sm:$0xff] }
  0x4c   :  { %117 = vperm.xlu0 %523, %v39_v17   ;;  %182 = vperm.xlu1 %520, %v35_v9  }
  0x53   :  { %198 = vperm.xlu2 %521, %v39_v17  }
  0x54   :  { %252 = vperm.xlu0 %523, %v234_v18   ;;  %194 = vperm.xlu1 %520, %v38_v11  }
  0x5b   :  { %525 = vset.pattern.permute.xlu2 %v555_v3 }
  0x5c   :  { %277 = vperm.xlu0 %523, %v239_v19   ;;  %524 = vset.pattern.permute.xlu1 %v555_v3  ;;  %v647_v22 = vpop.permute.xlu2 %62 }
  0x5d   :  { %262 = vperm.xlu2 %525, %v236_v20   ;;  %257 = vperm.xlu1 %524, %v235_v21   ;;  %v125_v1 = vmul.f32 %v674_v31, %v647_v22 }
  0x64   :  { %292 = vperm.xlu0 %523, %v242_v23   ;;  %v658_v26 = vpop.permute.xlu2 %67 }
  0x65   :  { %272 = vperm.xlu2 %525, %v238_v24   ;;  %267 = vperm.xlu1 %524, %v237_v25   ;;  %v374_v25 = vld [vmem:[%s839_s3 + $0x60] sm:$0xff] }
  0x6c   :  { %307 = vperm.xlu0 %523, %v245_v27   ;;  %v669_v30 = vpop.permute.xlu2 %82  ;;  %v373_v27 = vld [vmem:[%s839_s3 + $0x58] sm:$0xff] }
  0x6d   :  { %287 = vperm.xlu2 %525, %v241_v28   ;;  %282 = vperm.xlu1 %524, %v240_v29  }
  0x74   :  { %322 = vperm.xlu0 %523, %v248_v32   ;;  %v690_v36 = vpop.permute.xlu2 %97 }
  0x75   :  { %v147_v37 = vpop.permute.xlu0 %146  ;;  %v53_v38 = vpop.permute.xlu1 %52  ;;  %302 = vperm.xlu2 %525, %v244_v34   ;;  %297 = vperm.xlu1 %524, %v243_v35  }
  0x76   :  { %v204_v39 = vmul.f32 %v682_v33, %v147_v37  ;;  %v123_v40 = vmul.f32 %v674_v31, %v53_v38 }
  0x78   :  { %v694_v41 = vadd.f32 %v204_v39, %v123_v40 }
  0x7c   :  { %385 = vperm.xlu0 %523, %v363_v42   ;;  %v705_v45 = vpop.permute.xlu2 %112  ;;  %v377_v42 = vld [vmem:[%s839_s3 + $0x78] sm:$0xff] }
  0x7d   :  { %v167_v46 = vpop.permute.xlu0 %166  ;;  %v707_v47 = vpop.permute.xlu1 %57  ;;  %317 = vperm.xlu2 %525, %v247_v43   ;;  %312 = vperm.xlu1 %524, %v246_v44   ;;  %v376_v43 = vld [vmem:[%s839_s3 + $0x70] sm:$0xff] }
  0x7e   :  { %v209_v51 = vmul.f32 %v682_v33, %v167_v46  ;;  %v124_v38 = vmul.f32 %v674_v31, %v707_v47 }
  0x84   :  { %400 = vperm.xlu0 %523, %v366_v48  }
  0x85   :  { %v179_v52 = vpop.permute.xlu0 %178  ;;  %v78_v53 = vpop.permute.xlu1 %77  ;;  %380 = vperm.xlu2 %525, %v362_v49   ;;  %327 = vperm.xlu1 %524, %v249_v50   ;;  %v126_v50 = vmul.f32 %v674_v31, %v658_v26 }
  0x86   :  { %v128_v54 = vmul.f32 %v674_v31, %v78_v53  ;;  %v143_v55 = vpop.permute.xlu2 %142  ;;  %v212_v62 = vmul.f32 %v682_v33, %v179_v52 }
  0x87   :  { %v203_v17 = vmul.f32 %v682_v33, %v143_v55 }
  0x88   :  { %v720_v56 = vadd.f32 %v209_v51, %v128_v54 }
  0x8c   :  { %415 = vperm.xlu0 %523, %v369_v57  }
  0x8d   :  { %v191_v60 = vpop.permute.xlu0 %190  ;;  %v93_v61 = vpop.permute.xlu1 %92  ;;  %395 = vperm.xlu2 %525, %v365_v58   ;;  %390 = vperm.xlu1 %524, %v364_v59  }
  0x8e   :  { %v131_v63 = vmul.f32 %v674_v31, %v93_v61  ;;  %v155_v0 = vpop.permute.xlu2 %154  ;;  %v215_v9 = vmul.f32 %v682_v33, %v191_v60  ;;  %v129_v60 = vmul.f32 %v674_v31, %v669_v30 }
  0x8f   :  { %v206_v2 = vmul.f32 %v682_v33, %v155_v0 }
  0x90   :  { %v736_v3 = vadd.f32 %v212_v62, %v131_v63 }
  0x91   :  { %v741_v5 = vadd.f32 %v206_v2, %v125_v1 }
  0x94   :  { %430 = vperm.xlu0 %523, %v372_v4  }
  0x95   :  { %v108_v8 = vpop.permute.xlu1 %107  ;;  %410 = vperm.xlu2 %525, %v368_v6   ;;  %405 = vperm.xlu1 %524, %v367_v7   ;;  %v132_v6 = vmul.f32 %v674_v31, %v690_v36 }
  0x96   :  { %v134_v10 = vmul.f32 %v674_v31, %v108_v8  ;;  %v163_v11 = vpop.permute.xlu2 %162  ;;  %v43_v12 = vpop.permute.xlu0 %42 }
  0x97   :  { %v121_v18 = vmul.f32 %v674_v31, %v43_v12  ;;  %v208_v34 = vmul.f32 %v682_v33, %v163_v11  ;;  %v135_v12 = vmul.f32 %v674_v31, %v705_v45 }
  0x98   :  { %v751_v13 = vadd.f32 %v215_v9, %v134_v10 }
  0x9c   :  { %445 = vperm.xlu0 %523, %v375_v14  }
  0x9d   :  { %425 = vperm.xlu2 %525, %v371_v15   ;;  %420 = vperm.xlu1 %524, %v370_v16  }
  0x9e   :  { %v175_v19 = vpop.permute.xlu2 %174  ;;  %v48_v20 = vpop.permute.xlu0 %47 }
  0x9f   :  { %v122_v21 = vmul.f32 %v674_v31, %v48_v20  ;;  %v139_v22 = vpop.permute.xlu1 %138  ;;  %v211_v48 = vmul.f32 %v682_v33, %v175_v19 }
  0xa0   :  { %v202_v23 = vmul.f32 %v682_v33, %v139_v22 }
  0xa1   :  { %v766_v24 = vadd.f32 %v203_v17, %v122_v21 }
  0xa2   :  { %v218_v28 = vadd.f32 %v202_v23, %v121_v18 }
  0xa5   :  { %440 = vperm.xlu2 %525, %v374_v25   ;;  %435 = vperm.xlu1 %524, %v373_v27  }
  0xa6   :  { %v187_v29 = vpop.permute.xlu2 %186  ;;  %v73_v32 = vpop.permute.xlu0 %72 }
  0xa7   :  { %v127_v35 = vmul.f32 %v674_v31, %v73_v32  ;;  %v151_v37 = vpop.permute.xlu1 %150  ;;  %v214_v57 = vmul.f32 %v682_v33, %v187_v29 }
  0xa8   :  { %v205_v39 = vmul.f32 %v682_v33, %v151_v37 }
  0xa9   :  { %v779_v40 = vadd.f32 %v208_v34, %v127_v35 }
  0xaa   :  { %v221_v44 = vadd.f32 %v205_v39, %v124_v38 }
  0xad   :  { %455 = vperm.xlu2 %525, %v377_v42   ;;  %450 = vperm.xlu1 %524, %v376_v43  }
  0xae   :  { %v88_v46 = vpop.permute.xlu0 %87  ;;  %v199_v51 = vpop.permute.xlu2 %198 }
  0xaf   :  { %v130_v47 = vmul.f32 %v674_v31, %v88_v46  ;;  %v159_v49 = vpop.permute.xlu1 %158  ;;  %v217_v1 = vmul.f32 %v682_v33, %v199_v51 }
  0xb0   :  { %v207_v52 = vmul.f32 %v682_v33, %v159_v49 }
  0xb1   :  { %v792_v53 = vadd.f32 %v211_v48, %v130_v47 }
  0xb2   :  { %v223_v54 = vadd.f32 %v207_v52, %v126_v50 }
  0xb6   :  { %v103_v55 = vpop.permute.xlu0 %102 }
  0xb7   :  { %v133_v58 = vmul.f32 %v674_v31, %v103_v55  ;;  %v171_v59 = vpop.permute.xlu1 %170  ;;  %v263_v26 = vpop.permute.xlu2 %262 }
  0xb8   :  { %v210_v61 = vmul.f32 %v682_v33, %v171_v59  ;;  %v332_v46 = vadd.f32 %v263_v26, %v694_v41 }
  0xb9   :  { %v799_v62 = vadd.f32 %v214_v57, %v133_v58 }
  0xba   :  { %v226_v63 = vadd.f32 %v210_v61, %v129_v60  ;;  %v348_v49 = vmax.f32 %v332_v46, 0.0 }
  0xbe   :  { %v118_v0 = vpop.permute.xlu0 %117 }
  0xbf   :  { %v136_v2 = vmul.f32 %v674_v31, %v118_v0  ;;  %v183_v4 = vpop.permute.xlu1 %182  ;;  %v273_v9 = vpop.permute.xlu2 %272 }
  0xc0   :  { %v213_v7 = vmul.f32 %v682_v33, %v183_v4  ;;  %v334_v50 = vadd.f32 %v273_v9, %v741_v5 }
  0xc1   :  { %v806_v8 = vadd.f32 %v217_v1, %v136_v2 }
  0xc2   :  { %v808_v30 = vadd.f32 %v213_v7, %v132_v6  ;;  %v350_v55 = vmax.f32 %v334_v50, 0.0 }
  0xc6   :  { %v253_v10 = vpop.permute.xlu0 %252 }
  0xc7   :  { %v195_v11 = vpop.permute.xlu1 %194  ;;  %v288_v16 = vpop.permute.xlu2 %287  ;;  %v330_v29 = vadd.f32 %v253_v10, %v218_v28 }
  0xc8   :  { %v216_v14 = vmul.f32 %v682_v33, %v195_v11  ;;  %v337_v41 = vadd.f32 %v288_v16, %v720_v56 }
  0xc9   :  { %v346_v45 = vmax.f32 %v330_v29, 0.0 }
  0xca   :  { %v813_v15 = vadd.f32 %v216_v14, %v135_v12  ;;  %v353_v6 = vmax.f32 %v337_v41, 0.0 }
  0xce   :  { %v278_v17 = vpop.permute.xlu0 %277 }
  0xcf   :  { %v258_v18 = vpop.permute.xlu1 %257  ;;  %v303_v20 = vpop.permute.xlu2 %302  ;;  %v335_v57 = vadd.f32 %v278_v17, %v223_v54 }
  0xd0   :  { %v331_v32 = vadd.f32 %v258_v18, %v766_v24 }
  0xd1   :  { %v351_v26 = vmax.f32 %v335_v57, 0.0 }
  0xd2   :  { %v347_v33 = vmax.f32 %v331_v32, 0.0 }
  0xd6   :  { %v293_v36 = vpop.permute.xlu0 %292 }
  0xd7   :  { %v268_v19 = vpop.permute.xlu1 %267  ;;  %v318_v23 = vpop.permute.xlu2 %317  ;;  %v338_v7 = vadd.f32 %v293_v36, %v226_v63 }
  0xd8   :  { %v333_v47 = vadd.f32 %v268_v19, %v221_v44 }
  0xd9   :  { %v354_v17 = vmax.f32 %v338_v7, 0.0 }
  0xda   :  { %v349_v51 = vmax.f32 %v333_v47, 0.0 }
  0xde   :  { %v308_v21 = vpop.permute.xlu0 %307 }
  0xdf   :  { %v283_v22 = vpop.permute.xlu1 %282  ;;  %v381_v31 = vpop.permute.xlu2 %380  ;;  %v341_v32 = vadd.f32 %v308_v21, %v808_v30 }
  0xe0   :  { %v458_v35 = vmul.f32 %v381_v31, %v346_v45  ;;  %v336_v60 = vadd.f32 %v283_v22, %v779_v40  ;;  %v340_v40 = vadd.f32 %v303_v20, %v736_v3 }
  0xe2   :  { %v352_v4 = vmax.f32 %v336_v60, 0.0  ;;  %v356_v29 = vmax.f32 %v340_v40, 0.0 }
  0xe6   :  { %v815_v25 = vpop.permute.xlu0 %322 }
  0xe7   :  { %v298_v27 = vpop.permute.xlu1 %297  ;;  %v396_v42 = vpop.permute.xlu2 %395  ;;  %v344_v46 = vadd.f32 %v815_v25, %v813_v15 }
  0xe8   :  { %v461_v58 = vmul.f32 %v396_v42, %v349_v51  ;;  %v339_v54 = vadd.f32 %v298_v27, %v792_v53  ;;  %v343_v27 = vadd.f32 %v318_v23, %v751_v13 }
  0xe9   :  { %v360_v47 = vmax.f32 %v344_v46, 0.0 }
  0xea   :  { %v355_v16 = vmax.f32 %v339_v54, 0.0  ;;  %v359_v42 = vmax.f32 %v343_v27, 0.0 }
  0xee   :  { %v386_v34 = vpop.permute.xlu0 %385 }
  0xef   :  { %v459_v37 = vmul.f32 %v386_v34, %v347_v33  ;;  %v313_v38 = vpop.permute.xlu1 %312  ;;  %v411_v52 = vpop.permute.xlu2 %410  ;;  %v357_v34 = vmax.f32 %v341_v32, 0.0 }
  0xf0   :  { %v464_v9 = vmul.f32 %v411_v52, %v352_v4  ;;  %v342_v36 = vadd.f32 %v313_v38, %v799_v62 }
  0xf1   :  { %v474_v39 = vadd.f32 %v459_v37, %v458_v35 }
  0xf2   :  { %v358_v35 = vmax.f32 %v342_v36, 0.0 }
  0xf6   :  { %v401_v48 = vpop.permute.xlu0 %400 }
  0xf7   :  { %v328_v43 = vpop.permute.xlu1 %327  ;;  %v462_v61 = vmul.f32 %v401_v48, %v350_v55  ;;  %v426_v11 = vpop.permute.xlu2 %425 }
  0xf8   :  { %v467_v31 = vmul.f32 %v426_v11, %v355_v16  ;;  %v345_v48 = vadd.f32 %v328_v43, %v806_v8  ;;  %v496_v8 = vstv %s840_s4 }
  0xfa   :  { %v361_v23 = vmax.f32 %v345_v48, 0.0 }
  0xfe   :  { %v416_v1 = vpop.permute.xlu0 %415 }
  0xff   :  { %v391_v28 = vpop.permute.xlu1 %390  ;;  %v465_v12 = vmul.f32 %v416_v1, %v353_v6  ;;  %v441_v53 = vpop.permute.xlu2 %440 }
 0x100   :  { %v460_v24 = vmul.f32 %v391_v28, %v348_v49  ;;  %v470_v30 = vmul.f32 %v441_v53, %v358_v35 }
 0x102   :  { %v475_v59 = vadd.f32 %v474_v39, %v460_v24 }
 0x104   :  { %v476_v0 = vadd.f32 %v475_v59, %v461_v58 }
 0x106   :  { %v477_v44 = vadd.f32 %v476_v0, %v462_v61  ;;  %v431_v19 = vpop.permute.xlu0 %430 }
 0x107   :  { %v406_v2 = vpop.permute.xlu1 %405  ;;  %v468_v45 = vmul.f32 %v431_v19, %v356_v29  ;;  %v456_v50 = vpop.permute.xlu2 %455 }
 0x108   :  { %v463_v5 = vmul.f32 %v406_v2, %v351_v26  ;;  %v473_v51 = vmul.f32 %v456_v50, %v361_v23 }
 0x10a   :  { %v478_v10 = vadd.f32 %v477_v44, %v463_v5 }
 0x10c   :  { %v479_v14 = vadd.f32 %v478_v10, %v464_v9 }
 0x10e   :  { %v480_v18 = vadd.f32 %v479_v14, %v465_v12  ;;  %v446_v39 = vpop.permute.xlu0 %445 }
 0x10f   :  { %v421_v56 = vpop.permute.xlu1 %420  ;;  %v471_v62 = vmul.f32 %v446_v39, %v359_v42 }
 0x110   :  { %v466_v22 = vmul.f32 %v421_v56, %v354_v17 }
 0x112   :  { %v481_v63 = vadd.f32 %v480_v18, %v466_v22 }
 0x114   :  { %v482_v33 = vadd.f32 %v481_v63, %v467_v31 }
 0x116   :  { %v483_v3 = vadd.f32 %v482_v33, %v468_v45 }
 0x117   :  { %v436_v20 = vpop.permute.xlu1 %435 }
 0x118   :  { %v469_v37 = vmul.f32 %v436_v20, %v357_v34 }
 0x11a   :  { %v484_v21 = vadd.f32 %v483_v3, %v469_v37 }
 0x11c   :  { %v485_v38 = vadd.f32 %v484_v21, %v470_v30 }
 0x11e   :  { %v486_v49 = vadd.f32 %v485_v38, %v471_v62 }
 0x11f   :  { %v451_v13 = vpop.permute.xlu1 %450 }
 0x120   :  { %v472_v28 = vmul.f32 %v451_v13, %v360_v47 }
 0x122   :  { %v487_v24 = vadd.f32 %v486_v49, %v472_v28 }
 0x124   :  { %v488_v52 = vadd.f32 %v487_v24, %v473_v51 }
 0x126   :  { %v489_v55 = vrot.slane %v488_v52, 4 }
 0x128   :  { %v490_v57 = vadd.f32 %v489_v55, %v488_v52 }
 0x12a   :  { %v491_v58 = vrot.slane %v490_v57, 2 }
 0x12c   :  { %v492_v59 = vadd.f32 %v491_v58, %v490_v57 }
 0x12e   :  { %v493_v15 = vrot.slane %v492_v59, 1 }
 0x130   :  { %v494_v25 = vadd.f32 %v493_v15, %v492_v59 }
 0x132   :  { %v497_v43 = vadd.f32 %v496_v8, %v494_v25 }
 0x134   :  { %498 = vst [vmem:[#allocation3] sm:$0x1] %v497_v43 }
 0x135   :  { %509 = dma.vmem_to_hbm [thread:$0]  %s505_s14, 16, %s507_s17, [#allocation4]  }
 0x136   :  { %552 = dma.done.wait [#allocation4], 16  }
 0x137   :  { %553 = vsyncadd [#allocation4], 4294967280 }
 0x138   :  { %514 = vsyncpa [#allocation4], 1 }

</bundles_post_ra>
